<compile_context>
chip_gen: v7x
topology: tpu7x:2x2x1
jax: 0.10.0
libtpu: 0.0.40
codegen_flags: <defaults>
</compile_context>

<pallas_src>
import functools

import jax
import jax.numpy as jnp
from jax.experimental import pallas as pl
from jax.experimental.pallas import tpu as pltpu

_VMEM_LIMIT_BYTES = 32 * 1024 * 1024     # safe on v5e/v6e (128 MiB) and v7x (64 MiB)
_TILE_BUDGET_BYTES = 4 * 1024 * 1024     # per-input-tile target (padded bytes)
_FUSED_MAX_F32_BYTES = 4 * 1024 * 1024   # fused single-pass path when padded f32(x) fits


def _round_up(v, m):
    return (v + m - 1) // m * m


def _sublane_multiple(dtype):
    # second-minor dim is padded to 8 (4B) / 16 (2B) / 32 (1B) in VMEM tiles
    return {4: 8, 2: 16, 1: 32}.get(jnp.dtype(dtype).itemsize, 8)


def _padded_tile_bytes(tn, c, thw, dtype):
    """VMEM footprint of a (tn, C, thw) tile including (sublane, lane) padding."""
    it = jnp.dtype(dtype).itemsize
    return tn * _round_up(c, _sublane_multiple(dtype)) * _round_up(thw, 128) * it


def _choose_tiles(n, c, hw, dtype, budget=_TILE_BUDGET_BYTES):
    """Pick (tn, thw): tn | n, thw | hw, thw lane-legal, padded tile <= budget."""
    # Legal thw values: the full row, or a multiple-of-128 divisor of hw.
    cands = [hw] + [d for d in range(hw // 128 * 128, 0, -128) if hw % d == 0]
    thw = None
    for cand in cands:
        if _padded_tile_bytes(1, c, cand, dtype) <= budget:
            thw = cand
            break
    if thw is None:
        # Pathological divisor structure: take the smallest legal tile anyway;
        # the vmem limit below is sized from the actual tile so we stay safe.
        thw = cands[-1]
    tn = 1
    for cand in range(n, 0, -1):
        if n % cand == 0 and _padded_tile_bytes(cand, c, thw, dtype) <= budget:
            tn = cand
            break
    return tn, thw


def _vmem_limit_for(tile_bytes):
    # input tile + output tile, each double-buffered, + f32 intermediates.
    return max(_VMEM_LIMIT_BYTES, 8 * tile_bytes)


def _bf16_valu_ok():
    """bf16 VPU exists on v6e/v7x; v5e and older chips lack it."""
    try:
        kind = jax.devices()[0].device_kind.lower()
    except Exception:
        return False
    return not any(t in kind for t in ("v2", "v3", "v4", "v5"))


# --------------------------------------------------------------------------
# Kernel 1 (tiled path, training): per-N-tile channel partial sums.
#   x block: (tn, C, thw);  out block: (1, C, 2)  [sum, sumsq] per channel,
#   accumulated across the HW grid axis (output block index is j-invariant).
#   N axis is 'parallel' -> v7x megacore shards the stats read across TCs.
# --------------------------------------------------------------------------
def _partial_stats_kernel(x_ref, out_ref):
    j = pl.program_id(1)
    x = x_ref[...].astype(jnp.float32)                                   # (tn, C, thw)
    s = jnp.sum(jnp.sum(x, axis=2, keepdims=True), axis=0, keepdims=True)      # (1, C, 1)
    q = jnp.sum(jnp.sum(x * x, axis=2, keepdims=True), axis=0, keepdims=True)  # (1, C, 1)
    partial = jnp.concatenate([s, q], axis=2)                            # (1, C, 2)

    @pl.when(j == 0)
    def _():
        out_ref[...] = partial

    @pl.when(j > 0)
    def _():
        out_ref[...] += partial


def _partial_channel_stats(x3d, tn, thw):
    N, C, HW = x3d.shape
    nt = N // tn
    tile_bytes = _padded_tile_bytes(tn, C, thw, x3d.dtype)
    return pl.pallas_call(
        _partial_stats_kernel,
        out_shape=jax.ShapeDtypeStruct((nt, C, 2), jnp.float32),
        grid_spec=pltpu.PrefetchScalarGridSpec(
            num_scalar_prefetch=0,
            grid=(nt, HW // thw),
            in_specs=[pl.BlockSpec((tn, C, thw), lambda i, j: (i, 0, j))],
            out_specs=pl.BlockSpec((1, C, 2), lambda i, j: (i, 0, 0))),
        compiler_params=pltpu.CompilerParams(
            dimension_semantics=("parallel", "arbitrary"),
            vmem_limit_bytes=_vmem_limit_for(tile_bytes)),
        cost_estimate=pl.CostEstimate(
            flops=3 * x3d.size, transcendentals=0,
            bytes_accessed=x3d.size * x3d.dtype.itemsize + nt * C * 2 * 4),
    )(x3d)


# --------------------------------------------------------------------------
# Kernel 2: elementwise normalization  y = x * scale[c] + shift[c].
# --------------------------------------------------------------------------
def _normalize_kernel(x_ref, scale_ref, shift_ref, o_ref, *, compute_dtype):
    x = x_ref[...].astype(compute_dtype)                     # (tn, C, thw)
    scale = scale_ref[...].astype(compute_dtype)[None]       # (1, C, 1)
    shift = shift_ref[...].astype(compute_dtype)[None]       # (1, C, 1)
    o_ref[...] = (x * scale + shift).astype(o_ref.dtype)


def _normalize(x3d, scale, shift, tn, thw):
    N, C, HW = x3d.shape
    compute_dtype = (jnp.bfloat16
                     if (x3d.dtype == jnp.bfloat16 and _bf16_valu_ok())
                     else jnp.float32)
    vec_spec = pl.BlockSpec((C, 1), lambda i, j: (0, 0))
    tile_bytes = _padded_tile_bytes(tn, C, thw, x3d.dtype)
    return pl.pallas_call(
        functools.partial(_normalize_kernel, compute_dtype=compute_dtype),
        out_shape=jax.ShapeDtypeStruct((N, C, HW), x3d.dtype),
        grid_spec=pltpu.PrefetchScalarGridSpec(
            num_scalar_prefetch=0,
            grid=(N // tn, HW // thw),
            in_specs=[pl.BlockSpec((tn, C, thw), lambda i, j: (i, 0, j)),
                      vec_spec, vec_spec],
            out_specs=pl.BlockSpec((tn, C, thw), lambda i, j: (i, 0, j))),
        compiler_params=pltpu.CompilerParams(
            dimension_semantics=("parallel", "parallel"),
            vmem_limit_bytes=_vmem_limit_for(tile_bytes)),
        cost_estimate=pl.CostEstimate(
            flops=2 * x3d.size, transcendentals=0,
            bytes_accessed=2 * x3d.size * x3d.dtype.itemsize),
    )(x3d, scale, shift)


# --------------------------------------------------------------------------
# Kernel 3 (fused path, training, small x): stats + EMA + normalize in one
# pass.  x is VMEM-resident, so HBM traffic is 1 read of x + 1 write of y.
# alpha is a runtime SMEM scalar -> no recompile when num_batches_tracked
# changes step to step.
# --------------------------------------------------------------------------
def _fused_train_kernel(alpha_ref, x_ref, rm_ref, rv_ref,
                        y_ref, new_rm_ref, new_rv_ref, *, inv_count, eps):
    x = x_ref[...].astype(jnp.float32)                          # (N, C, HW)
    s = jnp.sum(jnp.sum(x, axis=2, keepdims=True), axis=0)      # (C, 1)
    q = jnp.sum(jnp.sum(x * x, axis=2, keepdims=True), axis=0)  # (C, 1)
    mean = s * inv_count
    var = q * inv_count - mean * mean                           # E[x^2] - E[x]^2
    alpha = alpha_ref[0]                                        # runtime scalar (SMEM)
    new_rm = (1.0 - alpha) * rm_ref[...] + alpha * mean
    new_rv = (1.0 - alpha) * rv_ref[...] + alpha * var
    new_rm_ref[...] = new_rm
    new_rv_ref[...] = new_rv
    scale = jax.lax.rsqrt(new_rv + eps)                         # EUP rsqrt on (C, 1)
    shift = -new_rm * scale
    y_ref[...] = (x * scale[None] + shift[None]).astype(y_ref.dtype)


def _fused_train(x3d, rm, rv, alpha, eps):
    N, C, HW = x3d.shape
    vec = jax.ShapeDtypeStruct((C, 1), jnp.float32)
    vec_spec = pl.BlockSpec((C, 1), lambda i: (0, 0))
    x_spec = pl.BlockSpec((N, C, HW), lambda i: (0, 0, 0))
    kernel = functools.partial(_fused_train_kernel,
                               inv_count=1.0 / float(N * HW), eps=float(eps))
    alpha_arr = jnp.reshape(alpha, (1,)).astype(jnp.float32)
    return pl.pallas_call(
        kernel,
        out_shape=(jax.ShapeDtypeStruct((N, C, HW), x3d.dtype), vec, vec),
        grid_spec=pltpu.PrefetchScalarGridSpec(
            num_scalar_prefetch=0,
            grid=(1,),
            in_specs=[pl.BlockSpec(memory_space=pltpu.MemorySpace.SMEM),  # alpha
                      x_spec, vec_spec, vec_spec],
            out_specs=(x_spec, vec_spec, vec_spec)),
        compiler_params=pltpu.CompilerParams(
            dimension_semantics=("arbitrary",),
            vmem_limit_bytes=_VMEM_LIMIT_BYTES),
        cost_estimate=pl.CostEstimate(
            flops=5 * x3d.size, transcendentals=C,
            bytes_accessed=2 * x3d.size * x3d.dtype.itemsize),
    )(alpha_arr, x3d, rm, rv)


# --------------------------------------------------------------------------
# Functional wrapper reproducing RunningNorm.forward (kept_axes=(1,), NCHW).
# Fully jit-able: no host syncs, no per-step recompiles (alpha is traced).
# --------------------------------------------------------------------------
def running_norm_forward(x_nchw, running_mean, running_var, num_batches_tracked,
                         eps=1e-5, momentum=None, training=True,
                         fused_max_bytes=_FUSED_MAX_F32_BYTES):
    N, C, H, W = x_nchw.shape
    HW = H * W
    count = N * HW

    # Free, contiguous views -- no transpose, no dtype change, no HBM traffic.
    x3d = x_nchw.reshape(N, C, HW)
    rm = running_mean.reshape(C, 1).astype(jnp.float32)
    rv = running_var.reshape(C, 1).astype(jnp.float32)
    nbt = jnp.asarray(num_batches_tracked, dtype=jnp.int32)

    if training:
        nbt = nbt + 1
        if momentum is None:
            alpha = 1.0 / nbt.astype(jnp.float32)     # runtime scalar, no recompile
        else:
            alpha = jnp.float32(momentum)

        if _padded_tile_bytes(N, C, HW, jnp.float32) <= fused_max_bytes:
            # Single HBM pass: read x once, write y once.
            y3d, rm, rv = _fused_train(x3d, rm, rv, alpha, eps)
        else:
            # Two-pass tiled path: megacore-parallel partial sums, tiny JAX
            # finalize, then a fully-parallel normalize kernel.
            tn, thw = _choose_tiles(N, C, HW, x3d.dtype)
            partial = _partial_channel_stats(x3d, tn, thw)       # (N//tn, C, 2)
            sums = jnp.sum(partial, axis=0)                      # (C, 2)
            mean = (sums[:, 0] / count)[:, None]                 # (C, 1)
            var = (sums[:, 1] / count)[:, None] - mean * mean
            rm = (1.0 - alpha) * rm + alpha * mean
            rv = (1.0 - alpha) * rv + alpha * var
            scale = jax.lax.rsqrt(rv + jnp.float32(eps))
            shift = -rm * scale
            y3d = _normalize(x3d, scale, shift, tn, thw)
    else:
        # Eval: running stats untouched; normalize with rsqrt(rv + eps).
        tn, thw = _choose_tiles(N, C, HW, x3d.dtype)
        scale = jax.lax.rsqrt(rv + jnp.float32(eps))
        shift = -rm * scale
        y3d = _normalize(x3d, scale, shift, tn, thw)

    y = y3d.reshape(N, C, H, W)                                  # free view back to NCHW
    return y, rm.reshape(C), rv.reshape(C), nbt


# --------------------------------------------------------------------------
# Pure-JAX reference (mirrors the PyTorch forward exactly).
# --------------------------------------------------------------------------
def running_norm_reference(x, running_mean, running_var, num_batches_tracked,
                           eps=1e-5, momentum=None, training=True):
    if training:
        nbt = int(num_batches_tracked) + 1
        alpha = (1.0 / float(nbt)) if momentum is None else float(momentum)
    else:
        nbt = int(num_batches_tracked)
        alpha = 0.0
    xf = x.astype(jnp.float32)
    batch_mean = jnp.mean(xf, axis=(0, 2, 3))
    batch_mean_x2 = jnp.mean(xf * xf, axis=(0, 2, 3))
    batch_var = batch_mean_x2 - batch_mean ** 2
    rm, rv = running_mean.astype(jnp.float32), running_var.astype(jnp.float32)
    if training:
        rm = (1 - alpha) * rm + alpha * batch_mean
        rv = (1 - alpha) * rv + alpha * batch_var
    mean = rm[None, :, None, None]
    std = jnp.sqrt(rv + eps)[None, :, None, None]
    return ((xf - mean) / std).astype(x.dtype), rm, rv, nbt


if __name__ == "__main__":
    key = jax.random.PRNGKey(0)
    N, C, H, W = 2, 4, 16, 16
    x = jax.random.normal(key, (N, C, H, W), dtype=jnp.float32) * 3.0 + 1.5

    # Deterministic buffer init (RunningNorm.__init__ / reset_running_stats).
    running_mean = jnp.zeros((C,), jnp.float32)
    running_var = jnp.ones((C,), jnp.float32)
    nbt0 = jnp.asarray(0, jnp.int32)

    fwd = jax.jit(running_norm_forward,
                  static_argnames=("eps", "momentum", "training", "fused_max_bytes"))

    # --- training step 1 (fused single-pass path; alpha = 1/1) ---
    y, rm1, rv1, nbt1 = fwd(x, running_mean, running_var, nbt0,
                            eps=1e-5, momentum=None, training=True)
    jax.block_until_ready(y)
    y_ref, rm_ref, rv_ref, nbt_ref = running_norm_reference(
        x, running_mean, running_var, 0, eps=1e-5, momentum=None, training=True)
    assert y.shape == x.shape and y.dtype == x.dtype
    assert int(nbt1) == nbt_ref
    assert jnp.allclose(rm1, rm_ref, atol=1e-5, rtol=1e-5)
    assert jnp.allclose(rv1, rv_ref, atol=1e-4, rtol=1e-4)
    assert jnp.allclose(y, y_ref, atol=1e-4, rtol=1e-4)

    # --- training step 2 (alpha = 1/2 is a runtime scalar: same executable) ---
    x2 = jax.random.normal(jax.random.PRNGKey(1), (N, C, H, W), jnp.float32) * 2.0 - 0.5
    y2, rm2, rv2, nbt2 = fwd(x2, rm1, rv1, nbt1,
                             eps=1e-5, momentum=None, training=True)
    jax.block_until_ready(y2)
    y2_ref, rm2_ref, rv2_ref, nbt2_ref = running_norm_reference(
        x2, rm_ref, rv_ref, nbt_ref, eps=1e-5, momentum=None, training=True)
    assert int(nbt2) == nbt2_ref
    assert jnp.allclose(rm2, rm2_ref, atol=1e-5, rtol=1e-5)
    assert jnp.allclose(rv2, rv2_ref, atol=1e-4, rtol=1e-4)
    assert jnp.allclose(y2, y2_ref, atol=1e-4, rtol=1e-4)

    # --- training via the tiled (large-x) path, forced for test coverage ---
    y3, rm3, rv3, nbt3 = fwd(x, running_mean, running_var, nbt0,
                             eps=1e-5, momentum=None, training=True,
                             fused_max_bytes=0)
    jax.block_until_ready(y3)
    assert int(nbt3) == nbt_ref
    assert jnp.allclose(rm3, rm_ref, atol=1e-5, rtol=1e-5)
    assert jnp.allclose(rv3, rv_ref, atol=1e-4, rtol=1e-4)
    assert jnp.allclose(y3, y_ref, atol=1e-4, rtol=1e-4)

    # --- eval step (normalize-only kernel, running stats untouched) ---
    y_ev, rm_ev, rv_ev, nbt_ev = fwd(x, rm2, rv2, nbt2,
                                     eps=1e-5, momentum=None, training=False)
    jax.block_until_ready(y_ev)
    y_ev_ref, rm_ev_ref, rv_ev_ref, nbt_ev_ref = running_norm_reference(
        x, rm2_ref, rv2_ref, nbt2_ref, eps=1e-5, momentum=None, training=False)
    assert int(nbt_ev) == nbt_ev_ref
    assert jnp.allclose(rm_ev, rm_ev_ref, atol=1e-6, rtol=1e-6)
    assert jnp.allclose(rv_ev, rv_ev_ref, atol=1e-6, rtol=1e-6)
    assert jnp.allclose(y_ev, y_ev_ref, atol=1e-4, rtol=1e-4)

    print("KERNEL_OK")
</pallas_src>

<mosaic_0001>
module attributes {stable_mosaic.version = 11 : i64} {
  func.func @_fused_train_kernel(%arg0: i32, %arg1: memref<1xf32, #tpu.memory_space<smem>>, %arg2: memref<2x4x256xf32, #tpu.memory_space<vmem>>, %arg3: memref<4x1xf32, #tpu.memory_space<vmem>>, %arg4: memref<4x1xf32, #tpu.memory_space<vmem>>, %arg5: memref<2x4x256xf32, #tpu.memory_space<vmem>>, %arg6: memref<4x1xf32, #tpu.memory_space<vmem>>, %arg7: memref<4x1xf32, #tpu.memory_space<vmem>>) attributes {dimension_semantics = [#tpu.dimension_semantics<arbitrary>], iteration_bounds = array<i64: 1>, scalar_prefetch = 0 : i64, scratch_operands = 0 : i64, tpu.core_type = #tpu.core_type<tc>, window_params = [{transform_indices = @transform_0, window_bounds = array<i64: 1>}, {pipeline_mode = #tpu.pipeline_mode<synchronous>, transform_indices = @transform_1, window_bounds = array<i64: 2, 4, 256>}, {pipeline_mode = #tpu.pipeline_mode<synchronous>, transform_indices = @transform_2, window_bounds = array<i64: 4, 1>}, {pipeline_mode = #tpu.pipeline_mode<synchronous>, transform_indices = @transform_3, window_bounds = array<i64: 4, 1>}, {pipeline_mode = #tpu.pipeline_mode<synchronous>, transform_indices = @transform_4, window_bounds = array<i64: 2, 4, 256>}, {pipeline_mode = #tpu.pipeline_mode<synchronous>, transform_indices = @transform_5, window_bounds = array<i64: 4, 1>}, {pipeline_mode = #tpu.pipeline_mode<synchronous>, transform_indices = @transform_6, window_bounds = array<i64: 4, 1>}]} {
    %c0 = arith.constant 0 : index
    %c0_0 = arith.constant 0 : index
    %c0_1 = arith.constant 0 : index
    %0 = vector.load %arg2[%c0, %c0_0, %c0_1] : memref<2x4x256xf32, #tpu.memory_space<vmem>>, vector<2x4x256xf32>
    %cst = arith.constant dense<0.000000e+00> : vector<2x4xf32>
    %1 = vector.multi_reduction <add>, %0, %cst [2] : vector<2x4x256xf32> to vector<2x4xf32>
    %2 = vector.shape_cast %1 : vector<2x4xf32> to vector<2x4x1xf32>
    %cst_2 = arith.constant dense<0.000000e+00> : vector<4x1xf32>
    %3 = vector.multi_reduction <add>, %2, %cst_2 [0] : vector<2x4x1xf32> to vector<4x1xf32>
    %4 = arith.mulf %0, %0 : vector<2x4x256xf32>
    %cst_3 = arith.constant dense<0.000000e+00> : vector<2x4xf32>
    %5 = vector.multi_reduction <add>, %4, %cst_3 [2] : vector<2x4x256xf32> to vector<2x4xf32>
    %6 = vector.shape_cast %5 : vector<2x4xf32> to vector<2x4x1xf32>
    %cst_4 = arith.constant dense<0.000000e+00> : vector<4x1xf32>
    %7 = vector.multi_reduction <add>, %6, %cst_4 [0] : vector<2x4x1xf32> to vector<4x1xf32>
    %cst_5 = arith.constant 0.001953125 : f32
    %8 = vector.broadcast %cst_5 : f32 to vector<4x1xf32>
    %9 = arith.mulf %3, %8 : vector<4x1xf32>
    %cst_6 = arith.constant 0.001953125 : f32
    %10 = vector.broadcast %cst_6 : f32 to vector<4x1xf32>
    %11 = arith.mulf %7, %10 : vector<4x1xf32>
    %12 = arith.mulf %9, %9 : vector<4x1xf32>
    %13 = arith.subf %11, %12 : vector<4x1xf32>
    %c0_7 = arith.constant 0 : index
    %14 = memref.load %arg1[%c0_7] : memref<1xf32, #tpu.memory_space<smem>>
    %cst_8 = arith.constant 1.000000e+00 : f32
    %15 = arith.subf %cst_8, %14 : f32
    %c0_9 = arith.constant 0 : index
    %c0_10 = arith.constant 0 : index
    %16 = vector.load %arg3[%c0_9, %c0_10] : memref<4x1xf32, #tpu.memory_space<vmem>>, vector<4x1xf32>
    %17 = vector.broadcast %15 : f32 to vector<4x1xf32>
    %18 = arith.mulf %17, %16 : vector<4x1xf32>
    %19 = vector.broadcast %14 : f32 to vector<4x1xf32>
    %20 = arith.mulf %19, %9 : vector<4x1xf32>
    %21 = arith.addf %18, %20 : vector<4x1xf32>
    %cst_11 = arith.constant 1.000000e+00 : f32
    %22 = arith.subf %cst_11, %14 : f32
    %c0_12 = arith.constant 0 : index
    %c0_13 = arith.constant 0 : index
    %23 = vector.load %arg4[%c0_12, %c0_13] : memref<4x1xf32, #tpu.memory_space<vmem>>, vector<4x1xf32>
    %24 = vector.broadcast %22 : f32 to vector<4x1xf32>
    %25 = arith.mulf %24, %23 : vector<4x1xf32>
    %26 = vector.broadcast %14 : f32 to vector<4x1xf32>
    %27 = arith.mulf %26, %13 : vector<4x1xf32>
    %28 = arith.addf %25, %27 : vector<4x1xf32>
    %c0_14 = arith.constant 0 : index
    %c0_15 = arith.constant 0 : index
    %29 = vector.load %arg6[%c0_14, %c0_15] : memref<4x1xf32, #tpu.memory_space<vmem>>, vector<4x1xf32>
    tpu.vector_store %arg6[%c0_14, %c0_15], %21 {strides = array<i32>} : memref<4x1xf32, #tpu.memory_space<vmem>>, vector<4x1xf32>,
    %c0_16 = arith.constant 0 : index
    %c0_17 = arith.constant 0 : index
    %30 = vector.load %arg7[%c0_16, %c0_17] : memref<4x1xf32, #tpu.memory_space<vmem>>, vector<4x1xf32>
    tpu.vector_store %arg7[%c0_16, %c0_17], %28 {strides = array<i32>} : memref<4x1xf32, #tpu.memory_space<vmem>>, vector<4x1xf32>,
    %cst_18 = arith.constant 9.99999974E-6 : f32
    %31 = vector.broadcast %cst_18 : f32 to vector<4x1xf32>
    %32 = arith.addf %28, %31 : vector<4x1xf32>
    %33 = math.rsqrt %32 : vector<4x1xf32>
    %cst_19 = arith.constant 0.000000e+00 : f32
    %34 = vector.broadcast %cst_19 : f32 to vector<4x1xf32>
    %35 = arith.subf %34, %21 : vector<4x1xf32>
    %36 = arith.mulf %35, %33 : vector<4x1xf32>
    %37 = vector.shape_cast %33 : vector<4x1xf32> to vector<1x4x1xf32>
    %38 = vector.broadcast %37 : vector<1x4x1xf32> to vector<2x4x256xf32>
    %39 = arith.mulf %0, %38 : vector<2x4x256xf32>
    %40 = vector.shape_cast %36 : vector<4x1xf32> to vector<1x4x1xf32>
    %41 = vector.broadcast %40 : vector<1x4x1xf32> to vector<2x4x256xf32>
    %42 = arith.addf %39, %41 : vector<2x4x256xf32>
    %c0_20 = arith.constant 0 : index
    %c0_21 = arith.constant 0 : index
    %c0_22 = arith.constant 0 : index
    %43 = vector.load %arg5[%c0_20, %c0_21, %c0_22] : memref<2x4x256xf32, #tpu.memory_space<vmem>>, vector<2x4x256xf32>
    tpu.vector_store %arg5[%c0_20, %c0_21, %c0_22], %42 {strides = array<i32>} : memref<2x4x256xf32, #tpu.memory_space<vmem>>, vector<2x4x256xf32>,
    return
  }
  func.func @transform_0(%arg0: i32) -> i32 {
    %c0_i32 = arith.constant 0 : i32
    %c0_i32_0 = arith.constant 0 : i32
    return %c0_i32 : i32
  }
  func.func @transform_1(%arg0: i32) -> (i32, i32, i32) {
    %c0_i32 = arith.constant 0 : i32
    %c0_i32_0 = arith.constant 0 : i32
    %c0_i32_1 = arith.constant 0 : i32
    %c0_i32_2 = arith.constant 0 : i32
    return %c0_i32, %c0_i32_0, %c0_i32_1 : i32, i32, i32
  }
  func.func @transform_2(%arg0: i32) -> (i32, i32) {
    %c0_i32 = arith.constant 0 : i32
    %c0_i32_0 = arith.constant 0 : i32
    %c0_i32_1 = arith.constant 0 : i32
    return %c0_i32, %c0_i32_0 : i32, i32
  }
  func.func @transform_3(%arg0: i32) -> (i32, i32) {
    %c0_i32 = arith.constant 0 : i32
    %c0_i32_0 = arith.constant 0 : i32
    %c0_i32_1 = arith.constant 0 : i32
    return %c0_i32, %c0_i32_0 : i32, i32
  }
  func.func @transform_4(%arg0: i32) -> (i32, i32, i32) {
    %c0_i32 = arith.constant 0 : i32
    %c0_i32_0 = arith.constant 0 : i32
    %c0_i32_1 = arith.constant 0 : i32
    %c0_i32_2 = arith.constant 0 : i32
    return %c0_i32, %c0_i32_0, %c0_i32_1 : i32, i32, i32
  }
  func.func @transform_5(%arg0: i32) -> (i32, i32) {
    %c0_i32 = arith.constant 0 : i32
    %c0_i32_0 = arith.constant 0 : i32
    %c0_i32_1 = arith.constant 0 : i32
    return %c0_i32, %c0_i32_0 : i32, i32
  }
  func.func @transform_6(%arg0: i32) -> (i32, i32) {
    %c0_i32 = arith.constant 0 : i32
    %c0_i32_0 = arith.constant 0 : i32
    %c0_i32_1 = arith.constant 0 : i32
    return %c0_i32, %c0_i32_0 : i32, i32
  }
}

</mosaic_0001>

<bundles_post_ra>
// kernel: running_norm_forward.1
= control target key start
LH: loop header
LB: loop body
LE: loop exit
PB: predicated region body
PF: predicated region fallthrough
CT: control target
= control target key end

     0   :  { %vm29_vm0 = vcmask 1043456   ;;  %v137_v20 = vmov 0   ;;  %vm80_vm1 = vcmask 3072   ;;  %v138_v49 = vmov 839922192   ;;  %s232_s1 = inlined_call_operand.vmem [shape: f32[2,4,256], index: 1, kind: input, shape index: {}]   ;;  %s233_s0 = inlined_call_operand.<no memory space> [shape: f32[1], index: 0, kind: input, shape index: {}]   ;;  %s234_s2 = inlined_call_operand.vmem [shape: f32[4,1], index: 2, kind: input, shape index: {}]   ;;  %s235_s3 = inlined_call_operand.vmem [shape: f32[4,1], index: 3, kind: input, shape index: {}]   ;;  %s236_s5 = inlined_call_operand.vmem [shape: f32[4,1], index: 5, kind: output, shape index: {1}]   ;;  %s237_s6 = inlined_call_operand.vmem [shape: f32[4,1], index: 6, kind: output, shape index: {2}]   ;;  %s238_s4 = inlined_call_operand.vmem [shape: f32[2,4,256], index: 4, kind: output, shape index: {0}]  }
   0x1   :  { %v177_v0 = vld [vmem:[%s232_s1] sm:$0xff]  ;;  %v182_v1 = vld [vmem:[%s232_s1 + $0x8] sm:$0xff]  ;;  %131 = vset.pattern.permute.xlu0 %v137_v20  ;;  %132 = vset.pattern.permute.xlu1 %v137_v20  ;;  %s69_s26 = ssub.f32 1.0, %s233_s0  ;;  %v73_v31 = vstv %s233_s0  ;;  %v92_v50 = vunpack.c.l.s4 %v138_v49  ;;  %v94_v51 = vlaneseq }
   0x2   :  { %v25_v2 = vcombine.high %v177_v0, %v177_v0  ;;  %v30_v3 = vsel %vm29_vm0, %v177_v0, 0.0  ;;  %v43_v4 = vmul.f32 %v177_v0, %v177_v0  ;;  %v26_v5 = vcombine.high %v182_v1, %v182_v1  ;;  %v70_v25 = vld [vmem:[%s234_s2] sm:$0xf] }
   0x3   :  { %v35_v6 = vsel %vm29_vm0, %v182_v1, 0.0  ;;  %v44_v7 = vmul.f32 %v182_v1, %v182_v1  ;;  %v71_v27 = vstv %s69_s26  ;;  %v76_v36 = vld [vmem:[%s235_s3] sm:$0xf]  ;;  %v93_v52 = vunpack.c.0.s8 %v92_v50 }
   0x4   :  { %v31_v8 = vsel %vm29_vm0, %v25_v2, 0.0  ;;  %v47_v9 = vcombine.high %v43_v4, %v43_v4  ;;  %v51_v10 = vsel %vm29_vm0, %v43_v4, 0.0  ;;  %v36_v11 = vsel %vm29_vm0, %v26_v5, 0.0 }
   0x5   :  { %v32_v12 = vadd.f32 %v31_v8, %v30_v3  ;;  %v48_v13 = vcombine.high %v44_v7, %v44_v7  ;;  %v56_v15 = vsel %vm29_vm0, %v44_v7, 0.0  ;;  %v37_v17 = vadd.f32 %v36_v11, %v35_v6 }
   0x6   :  { %v52_v14 = vsel %vm29_vm0, %v47_v9, 0.0  ;;  %v72_v34 = vmul.f32 %v71_v27, %v70_v25  ;;  %v77_v41 = vmul.f32 %v76_v36, %v71_v27  ;;  %v95_v53 = vshrl.u32 %v94_v51, 7 }
   0x7   :  { %33 = vadd.xlane.f32.xlu0 %v32_v12  ;;  %v53_v16 = vadd.f32 %v52_v14, %v51_v10  ;;  %v57_v18 = vsel %vm29_vm0, %v48_v13, 0.0 }
   0x8   :  { %v58_v19 = vadd.f32 %v57_v18, %v56_v15  ;;  %v96_v54 = vsub.s32 %v93_v52, %v95_v53 }
   0x9   :  { %54 = vadd.xlane.f32.xlu1 %v53_v16 }
   0xb   :  { %38 = vadd.xlane.f32.xlu0 %v37_v17 }
   0xd   :  { %59 = vadd.xlane.f32.xlu1 %v58_v19 }
  0x94   :  { %v34_v21 = vpop.xlane.xlu0 %33 }
  0x95   :  { %v40_v24 = vsel %vm29_vm0, %v34_v21, 0.0 }
  0x96   :  { %v55_v22 = vpop.xlane.xlu1 %54 }
  0x97   :  { %v61_v30 = vsel %vm29_vm0, %v55_v22, 0.0 }
  0x98   :  { %v39_v23 = vpop.xlane.xlu0 %38 }
  0x99   :  { %v41_v26 = vsel %vm29_vm0, %v39_v23, 0.0 }
  0x9a   :  { %v42_v28 = vadd.f32 %v41_v26, %v40_v24  ;;  %v60_v29 = vpop.xlane.xlu1 %59 }
  0x9b   :  { %v62_v32 = vsel %vm29_vm0, %v60_v29, 0.0 }
  0x9c   :  { %v64_v33 = vmul.f32 0.001953125, %v42_v28  ;;  %v63_v35 = vadd.f32 %v62_v32, %v61_v30 }
  0x9e   :  { %v66_v37 = vmul.f32 %v64_v33, %v64_v33  ;;  %v74_v38 = vmul.f32 %v73_v31, %v64_v33  ;;  %v65_v39 = vmul.f32 0.001953125, %v63_v35 }
  0xa0   :  { %v75_v40 = vadd.f32 %v74_v38, %v72_v34  ;;  %v67_v42 = vsub.f32 %v65_v39, %v66_v37 }
  0xa2   :  { %81 = vst.msk [vmem:[%s236_s5] sm:$0xf] %vm80_vm1, %v75_v40  ;;  %v78_v43 = vmul.f32 %v73_v31, %v67_v42  ;;  %v85_v46 = vsub.f32 0.0, %v75_v40 }
  0xa4   :  { %v79_v44 = vadd.f32 %v78_v43, %v77_v41 }
  0xa6   :  { %82 = vst.msk [vmem:[%s237_s6] sm:$0xf] %vm80_vm1, %v79_v44  ;;  %v83_v45 = vadd.f32 1e-05, %v79_v44 }
  0xa8   :  { %135 = vrsqrt.f32 %v83_v45 }
  0xb2   :  { %v136_v47 = vpop.eup %135 }
  0xb3   :  { %89 = vperm.xlu0 %131, %v136_v47   ;;  %v86_v48 = vmul.f32 %v136_v47, %v85_v46 }
  0xb5   :  { %103 = vperm.xlu1 %132, %v86_v48  }
 0x132   :  { %v90_v55 = vpop.permute.xlu0 %89 }
 0x133   :  { %v97_v56 = vrot.slane %v90_v55, %v96_v54 }
 0x134   :  { %v104_v57 = vpop.permute.xlu1 %103 }
 0x135   :  { %v99_v58 = vmul.f32 %v97_v56, %v177_v0  ;;  %v100_v59 = vmul.f32 %v97_v56, %v182_v1  ;;  %v111_v60 = vrot.slane %v104_v57, %v96_v54 }
 0x137   :  { %v113_v61 = vadd.f32 %v111_v60, %v99_v58  ;;  %v114_v62 = vadd.f32 %v111_v60, %v100_v59 }
 0x139   :  { %115 = vst [vmem:[%s238_s4] sm:$0xff] %v113_v61  ;;  %116 = vst [vmem:[%s238_s4 + $0x8] sm:$0xff] %v114_v62 }

</bundles_post_ra>
